<compile_context>
chip_gen: v7x
topology: tpu7x:2x2x1
jax: 0.10.0
libtpu: 0.0.40
codegen_flags: <defaults>
</compile_context>

<pallas_src>
from functools import partial

import jax
import jax.numpy as jnp
from jax.experimental import pallas as pl
from jax.experimental.pallas import tpu as pltpu

EPS = 1e-10


def _pick_hw_tile(hw, c_rows, bytes_per_elem, budget_bytes=2 * 1024 * 1024):
    """Largest tile that divides hw, is a multiple of 128, and fits the budget."""
    if hw * c_rows * bytes_per_elem <= budget_bytes or hw < 128:
        return hw
    max_elems = max(128, budget_bytes // (bytes_per_elem * max(c_rows, 1)))
    t = (max_elems // 128) * 128
    while t >= 128:
        if hw % t == 0:
            return t
        t -= 128
    return hw  # no nice divisor; fall back to the full row


# ----------------------------------------------------------------------------
# Kernel 1: per-channel filtered moments, two-pass tiled reduction.
#   x3 block : (1, c_tile, hw_tile), channels on sublanes, HW on lanes.
#   grid     : (c_blocks ["parallel"], pass=2, B, HW-tiles)  (reduction axes
#              "arbitrary", pass axis outermost-of-the-serial part).
#   outputs  : fm, fv of shape (C, 1)  (tiny).
# ----------------------------------------------------------------------------
def _stats_kernel(thres, inv_n, inv_nm1,
                  x_ref, fm_ref, fv_ref,
                  s_a, s_b, s_cnt, mean_sc, band_sc):
    p = pl.program_id(1)
    b = pl.program_id(2)
    j = pl.program_id(3)
    first = jnp.logical_and(b == 0, j == 0)
    last = jnp.logical_and(b == pl.num_programs(2) - 1,
                           j == pl.num_programs(3) - 1)

    x = x_ref[0].astype(jnp.float32)                      # (c_tile, hw_tile)

    # ---- pass 0: raw sums -> per-channel mean and selection band -----------
    @pl.when(jnp.logical_and(p == 0, first))
    def _():
        s_a[...] = jnp.zeros_like(s_a)
        s_b[...] = jnp.zeros_like(s_b)

    @pl.when(p == 0)
    def _():
        s_a[...] += jnp.sum(x, axis=-1, keepdims=True)
        s_b[...] += jnp.sum(x * x, axis=-1, keepdims=True)

    @pl.when(jnp.logical_and(p == 0, last))
    def _():
        mean = s_a[...] * inv_n
        var = (s_b[...] - s_a[...] * mean) * inv_nm1      # unbiased (torch.var)
        mean_sc[...] = mean
        # |x - mean| < band  <=>  -thres < (x-mean)/sqrt(var+eps) < thres
        band_sc[...] = thres * jnp.sqrt(var + EPS)

    # ---- pass 1: filtered sums, centered around the pass-0 mean ------------
    @pl.when(jnp.logical_and(p == 1, first))
    def _():
        s_a[...] = jnp.zeros_like(s_a)
        s_b[...] = jnp.zeros_like(s_b)
        s_cnt[...] = jnp.zeros_like(s_cnt)

    @pl.when(p == 1)
    def _():
        xc = x - mean_sc[...]
        sel = (jnp.abs(xc) < band_sc[...]).astype(jnp.float32)
        s_cnt[...] += jnp.sum(sel, axis=-1, keepdims=True)
        s_a[...] += jnp.sum(xc * sel, axis=-1, keepdims=True)
        s_b[...] += jnp.sum(xc * xc * sel, axis=-1, keepdims=True)

    @pl.when(jnp.logical_and(p == 1, last))
    def _():
        inv_cnt = 1.0 / s_cnt[...]                        # NaN/Inf if cnt==0 (matches ref)
        d = s_a[...] * inv_cnt                            # fm - mean
        fm_ref[...] = mean_sc[...] + d
        fv_ref[...] = s_b[...] * inv_cnt - d * d


# ----------------------------------------------------------------------------
# Kernel 2: elementwise affine normalization (memory-bound, lane-dense).
#   x block    : (1, C, hw_tile)
#   gamma/beta : (1, C, 1)  resident  (broadcast along HW)
#   rm/istd    : (1, 1, hw_tile)      (broadcast along C; per-w because W==C)
# ----------------------------------------------------------------------------
def _norm_kernel(x_ref, g_ref, b_ref, rm_ref, istd_ref, out_ref):
    x = x_ref[...].astype(jnp.float32)
    y = g_ref[...] * (x - rm_ref[...]) * istd_ref[...] + b_ref[...]
    out_ref[...] = y.astype(out_ref.dtype)


def bn2d_filtered_moments(x, gamma, beta, running_mean, running_var,
                          *, thres=4.0, alpha=0.9):
    """Forward pass of BN2dFitleredMoments.

    Returns (out, new_running_mean, new_running_var) — the PyTorch module
    mutates self.Mean / self.Var; we return the updated buffers instead.
    """
    B, C, H, W = x.shape
    # The PyTorch .expand of the (C,)-shaped running stats onto (B, C, H, W)
    # broadcasts along the LAST (W) axis and only works when W == C.
    assert W == C, "reference semantics require W == C"
    HW = H * W
    N = B * HW
    bytes_per_elem = jnp.dtype(x.dtype).itemsize

    x3 = x.reshape(B, C, HW)                              # zero-copy NCHW view

    # --- kernel 1: per-channel filtered moments ------------------------------
    c_tile = C // 2 if (C % 16 == 0) else C               # 2 "parallel" channel blocks
    c_blocks = C // c_tile
    hw_tile_s = _pick_hw_tile(HW, c_tile, bytes_per_elem)
    hw_blocks_s = HW // hw_tile_s

    fm, fv = pl.pallas_call(
        partial(_stats_kernel, float(thres), 1.0 / N, 1.0 / max(N - 1, 1)),
        out_shape=(jax.ShapeDtypeStruct((C, 1), jnp.float32),
                   jax.ShapeDtypeStruct((C, 1), jnp.float32)),
        grid=(c_blocks, 2, B, hw_blocks_s),
        in_specs=[pl.BlockSpec((1, c_tile, hw_tile_s),
                               lambda c, p, b, j: (b, c, j))],
        out_specs=(pl.BlockSpec((c_tile, 1), lambda c, p, b, j: (c, 0)),
                   pl.BlockSpec((c_tile, 1), lambda c, p, b, j: (c, 0))),
        scratch_shapes=[pltpu.VMEM((c_tile, 1), jnp.float32)] * 5,
        compiler_params=pltpu.CompilerParams(
            dimension_semantics=("parallel", "arbitrary", "arbitrary", "arbitrary")),
    )(x3)

    # --- tiny (C,)-sized glue in plain JAX ------------------------------------
    fm_c = fm.reshape(C)
    fv_c = fv.reshape(C)
    new_mean = alpha * running_mean.astype(jnp.float32) + (1.0 - alpha) * fm_c
    new_var = alpha * running_var.astype(jnp.float32) + (1.0 - alpha) * fv_c
    inv_std = 1.0 / jnp.sqrt(new_var + EPS)

    # W == C quirk: running stats broadcast along W; tile along H so the
    # normalize kernel consumes lane-dense (1, 1, H*W) rows.
    rm_hw = jnp.tile(new_mean, H).reshape(1, 1, HW)
    istd_hw = jnp.tile(inv_std, H).reshape(1, 1, HW)
    g3 = gamma.reshape(1, C, 1).astype(jnp.float32)
    b3 = beta.reshape(1, C, 1).astype(jnp.float32)

    # --- kernel 2: elementwise normalization ----------------------------------
    hw_tile_n = _pick_hw_tile(HW, C, bytes_per_elem)
    hw_blocks_n = HW // hw_tile_n

    out3 = pl.pallas_call(
        _norm_kernel,
        out_shape=jax.ShapeDtypeStruct((B, C, HW), x.dtype),
        grid=(B, hw_blocks_n),
        in_specs=[
            pl.BlockSpec((1, C, hw_tile_n), lambda b, j: (b, 0, j)),   # x
            pl.BlockSpec((1, C, 1), lambda b, j: (0, 0, 0)),           # gamma (resident)
            pl.BlockSpec((1, C, 1), lambda b, j: (0, 0, 0)),           # beta  (resident)
            pl.BlockSpec((1, 1, hw_tile_n), lambda b, j: (0, 0, j)),   # new mean (per w)
            pl.BlockSpec((1, 1, hw_tile_n), lambda b, j: (0, 0, j)),   # 1/sqrt(new var)
        ],
        out_specs=pl.BlockSpec((1, C, hw_tile_n), lambda b, j: (b, 0, j)),
        compiler_params=pltpu.CompilerParams(
            dimension_semantics=("parallel", "parallel")),
    )(x3, g3, b3, rm_hw, istd_hw)

    return out3.reshape(B, C, H, W), new_mean, new_var


# ----------------------------------------------------------------------------
# Pure-JAX reference (mirrors the PyTorch forward, including the W==C quirk).
# ----------------------------------------------------------------------------
def reference(x, gamma, beta, rm, rv, thres=4.0, alpha=0.9):
    B, C, H, W = x.shape
    xc = jnp.transpose(x, (1, 0, 2, 3)).reshape(C, -1)
    mean = jnp.mean(xc, axis=-1, keepdims=True)
    var = jnp.var(xc, axis=-1, ddof=1, keepdims=True)
    norm = (xc - mean) / jnp.sqrt(var + EPS)
    sel = ((norm < thres) & (norm > -thres)).astype(jnp.float32)
    fm = jnp.sum(xc * sel, -1) / jnp.sum(sel, -1)
    fv = jnp.sum(((xc - fm[:, None]) ** 2) * sel, -1) / jnp.sum(sel, -1)
    new_rm = alpha * rm + (1.0 - alpha) * fm
    new_rv = alpha * rv + (1.0 - alpha) * fv
    mean_exp = jnp.broadcast_to(new_rm.reshape(1, 1, 1, C), x.shape)  # expand along W (W==C)
    var_exp = jnp.broadcast_to(new_rv.reshape(1, 1, 1, C), x.shape)
    g = jnp.broadcast_to(gamma.reshape(1, C, 1, 1), x.shape)
    b = jnp.broadcast_to(beta.reshape(1, C, 1, 1), x.shape)
    out = g * (x - mean_exp) / jnp.sqrt(var_exp + EPS) + b
    return out, new_rm, new_rv


if __name__ == "__main__":
    B, C, H, W = 2, 16, 8, 16  # W must equal C (see note above)
    key = jax.random.PRNGKey(0)
    x = jax.random.normal(key, (B, C, H, W), dtype=jnp.float32)
    # Inject outliers so the |z| < Thres filtering actually drops samples.
    x = x.at[:, :, 0, 0].set(50.0)

    # Deterministic parameters / buffers (module init: beta=0, gamma=1,
    # running Mean=0, Var=1; use slightly non-trivial affine values).
    gamma = 1.0 + 0.05 * jnp.arange(C, dtype=jnp.float32)
    beta = 0.01 * jnp.arange(C, dtype=jnp.float32)
    running_mean = jnp.zeros((C,), dtype=jnp.float32)
    running_var = jnp.ones((C,), dtype=jnp.float32)

    fn = jax.jit(partial(bn2d_filtered_moments, thres=4.0, alpha=0.9))
    out, new_mean, new_var = fn(x, gamma, beta, running_mean, running_var)
    out = jax.block_until_ready(out)

    ref_out, ref_rm, ref_rv = reference(x, gamma, beta, running_mean, running_var,
                                        thres=4.0, alpha=0.9)
    assert out.shape == (B, C, H, W)
    assert jnp.allclose(out, ref_out, rtol=1e-5, atol=1e-5), (
        float(jnp.max(jnp.abs(out - ref_out))))
    assert jnp.allclose(new_mean, ref_rm, rtol=1e-5, atol=1e-5), (
        float(jnp.max(jnp.abs(new_mean - ref_rm))))
    assert jnp.allclose(new_var, ref_rv, rtol=1e-5, atol=1e-5), (
        float(jnp.max(jnp.abs(new_var - ref_rv))))
    print("KERNEL_OK")
</pallas_src>

<mosaic_0001>
module attributes {stable_mosaic.version = 11 : i64} {
  func.func @_stats_kernel(%arg0: i32, %arg1: i32, %arg2: i32, %arg3: i32, %arg4: memref<1x8x128xf32, #tpu.memory_space<vmem>>, %arg5: memref<8x1xf32, #tpu.memory_space<vmem>>, %arg6: memref<8x1xf32, #tpu.memory_space<vmem>>, %arg7: memref<8x1xf32, #tpu.memory_space<vmem>>, %arg8: memref<8x1xf32, #tpu.memory_space<vmem>>, %arg9: memref<8x1xf32, #tpu.memory_space<vmem>>, %arg10: memref<8x1xf32, #tpu.memory_space<vmem>>, %arg11: memref<8x1xf32, #tpu.memory_space<vmem>>) attributes {dimension_semantics = [#tpu.dimension_semantics<parallel>, #tpu.dimension_semantics<arbitrary>, #tpu.dimension_semantics<arbitrary>, #tpu.dimension_semantics<arbitrary>], iteration_bounds = array<i64: 2, 2, 2, 1>, scalar_prefetch = 0 : i64, scratch_operands = 5 : i64, tpu.core_type = #tpu.core_type<tc>, window_params = [{transform_indices = @transform_0, window_bounds = array<i64: 1, 8, 128>}, {transform_indices = @transform_1, window_bounds = array<i64: 8, 1>}, {transform_indices = @transform_2, window_bounds = array<i64: 8, 1>}]} {
    %c0_i32 = arith.constant 0 : i32
    %0 = arith.cmpi eq, %arg2, %c0_i32 : i32
    %c0_i32_0 = arith.constant 0 : i32
    %1 = arith.cmpi eq, %arg3, %c0_i32_0 : i32
    %2 = arith.andi %0, %1 : i1
    %c1_i32 = arith.constant 1 : i32
    %3 = arith.cmpi eq, %arg2, %c1_i32 : i32
    %c0_i32_1 = arith.constant 0 : i32
    %4 = arith.cmpi eq, %arg3, %c0_i32_1 : i32
    %5 = arith.andi %3, %4 : i1
    %c0 = arith.constant 0 : index
    %c0_2 = arith.constant 0 : index
    %c0_3 = arith.constant 0 : index
    %6 = vector.load %arg4[%c0, %c0_2, %c0_3] : memref<1x8x128xf32, #tpu.memory_space<vmem>>, vector<1x8x128xf32>
    %7 = vector.shape_cast %6 : vector<1x8x128xf32> to vector<8x128xf32>
    %c0_i32_4 = arith.constant 0 : i32
    %8 = arith.cmpi eq, %arg1, %c0_i32_4 : i32
    %9 = arith.andi %8, %2 : i1
    %10 = arith.extui %9 : i1 to i32
    %c0_i32_5 = arith.constant 0 : i32
    %11 = arith.cmpi ne, %10, %c0_i32_5 : i32
    scf.if %11 {
      %cst = arith.constant 0.000000e+00 : f32
      %30 = vector.broadcast %cst : f32 to vector<8x1xf32>
      %c0_16 = arith.constant 0 : index
      %c0_17 = arith.constant 0 : index
      %31 = vector.load %arg7[%c0_16, %c0_17] : memref<8x1xf32, #tpu.memory_space<vmem>>, vector<8x1xf32>
      tpu.vector_store %arg7[%c0_16, %c0_17], %30 {strides = array<i32>} : memref<8x1xf32, #tpu.memory_space<vmem>>, vector<8x1xf32>,
      %cst_18 = arith.constant 0.000000e+00 : f32
      %32 = vector.broadcast %cst_18 : f32 to vector<8x1xf32>
      %c0_19 = arith.constant 0 : index
      %c0_20 = arith.constant 0 : index
      %33 = vector.load %arg8[%c0_19, %c0_20] : memref<8x1xf32, #tpu.memory_space<vmem>>, vector<8x1xf32>
      tpu.vector_store %arg8[%c0_19, %c0_20], %32 {strides = array<i32>} : memref<8x1xf32, #tpu.memory_space<vmem>>, vector<8x1xf32>,
    } else {
    }
    %c0_i32_6 = arith.constant 0 : i32
    %12 = arith.cmpi eq, %arg1, %c0_i32_6 : i32
    %13 = arith.extui %12 : i1 to i32
    %c0_i32_7 = arith.constant 0 : i32
    %14 = arith.cmpi ne, %13, %c0_i32_7 : i32
    scf.if %14 {
      %c0_16 = arith.constant 0 : index
      %c0_17 = arith.constant 0 : index
      %30 = vector.load %arg7[%c0_16, %c0_17] : memref<8x1xf32, #tpu.memory_space<vmem>>, vector<8x1xf32>
      %cst = arith.constant dense<0.000000e+00> : vector<8xf32>
      %31 = vector.multi_reduction <add>, %7, %cst [1] : vector<8x128xf32> to vector<8xf32>
      %32 = vector.shape_cast %31 : vector<8xf32> to vector<8x1xf32>
      %33 = arith.addf %30, %32 : vector<8x1xf32>
      %c0_18 = arith.constant 0 : index
      %c0_19 = arith.constant 0 : index
      %34 = vector.load %arg7[%c0_18, %c0_19] : memref<8x1xf32, #tpu.memory_space<vmem>>, vector<8x1xf32>
      tpu.vector_store %arg7[%c0_18, %c0_19], %33 {strides = array<i32>} : memref<8x1xf32, #tpu.memory_space<vmem>>, vector<8x1xf32>,
      %c0_20 = arith.constant 0 : index
      %c0_21 = arith.constant 0 : index
      %35 = vector.load %arg8[%c0_20, %c0_21] : memref<8x1xf32, #tpu.memory_space<vmem>>, vector<8x1xf32>
      %36 = arith.mulf %7, %7 : vector<8x128xf32>
      %cst_22 = arith.constant dense<0.000000e+00> : vector<8xf32>
      %37 = vector.multi_reduction <add>, %36, %cst_22 [1] : vector<8x128xf32> to vector<8xf32>
      %38 = vector.shape_cast %37 : vector<8xf32> to vector<8x1xf32>
      %39 = arith.addf %35, %38 : vector<8x1xf32>
      %c0_23 = arith.constant 0 : index
      %c0_24 = arith.constant 0 : index
      %40 = vector.load %arg8[%c0_23, %c0_24] : memref<8x1xf32, #tpu.memory_space<vmem>>, vector<8x1xf32>
      tpu.vector_store %arg8[%c0_23, %c0_24], %39 {strides = array<i32>} : memref<8x1xf32, #tpu.memory_space<vmem>>, vector<8x1xf32>,
    } else {
    }
    %c0_i32_8 = arith.constant 0 : i32
    %15 = arith.cmpi eq, %arg1, %c0_i32_8 : i32
    %16 = arith.andi %15, %5 : i1
    %17 = arith.extui %16 : i1 to i32
    %c0_i32_9 = arith.constant 0 : i32
    %18 = arith.cmpi ne, %17, %c0_i32_9 : i32
    scf.if %18 {
      %c0_16 = arith.constant 0 : index
      %c0_17 = arith.constant 0 : index
      %30 = vector.load %arg7[%c0_16, %c0_17] : memref<8x1xf32, #tpu.memory_space<vmem>>, vector<8x1xf32>
      %cst = arith.constant 3.906250e-03 : f32
      %31 = vector.broadcast %cst : f32 to vector<8x1xf32>
      %32 = arith.mulf %30, %31 : vector<8x1xf32>
      %c0_18 = arith.constant 0 : index
      %c0_19 = arith.constant 0 : index
      %33 = vector.load %arg8[%c0_18, %c0_19] : memref<8x1xf32, #tpu.memory_space<vmem>>, vector<8x1xf32>
      %c0_20 = arith.constant 0 : index
      %c0_21 = arith.constant 0 : index
      %34 = vector.load %arg7[%c0_20, %c0_21] : memref<8x1xf32, #tpu.memory_space<vmem>>, vector<8x1xf32>
      %35 = arith.mulf %34, %32 : vector<8x1xf32>
      %36 = arith.subf %33, %35 : vector<8x1xf32>
      %cst_22 = arith.constant 0.00392156886 : f32
      %37 = vector.broadcast %cst_22 : f32 to vector<8x1xf32>
      %38 = arith.mulf %36, %37 : vector<8x1xf32>
      %c0_23 = arith.constant 0 : index
      %c0_24 = arith.constant 0 : index
      %39 = vector.load %arg10[%c0_23, %c0_24] : memref<8x1xf32, #tpu.memory_space<vmem>>, vector<8x1xf32>
      tpu.vector_store %arg10[%c0_23, %c0_24], %32 {strides = array<i32>} : memref<8x1xf32, #tpu.memory_space<vmem>>, vector<8x1xf32>,
      %cst_25 = arith.constant 1.000000e-10 : f32
      %40 = vector.broadcast %cst_25 : f32 to vector<8x1xf32>
      %41 = arith.addf %38, %40 : vector<8x1xf32>
      %42 = math.sqrt %41 : vector<8x1xf32>
      %cst_26 = arith.constant 4.000000e+00 : f32
      %43 = vector.broadcast %cst_26 : f32 to vector<8x1xf32>
      %44 = arith.mulf %43, %42 : vector<8x1xf32>
      %c0_27 = arith.constant 0 : index
      %c0_28 = arith.constant 0 : index
      %45 = vector.load %arg11[%c0_27, %c0_28] : memref<8x1xf32, #tpu.memory_space<vmem>>, vector<8x1xf32>
      tpu.vector_store %arg11[%c0_27, %c0_28], %44 {strides = array<i32>} : memref<8x1xf32, #tpu.memory_space<vmem>>, vector<8x1xf32>,
    } else {
    }
    %c1_i32_10 = arith.constant 1 : i32
    %19 = arith.cmpi eq, %arg1, %c1_i32_10 : i32
    %20 = arith.andi %19, %2 : i1
    %21 = arith.extui %20 : i1 to i32
    %c0_i32_11 = arith.constant 0 : i32
    %22 = arith.cmpi ne, %21, %c0_i32_11 : i32
    scf.if %22 {
      %cst = arith.constant 0.000000e+00 : f32
      %30 = vector.broadcast %cst : f32 to vector<8x1xf32>
      %c0_16 = arith.constant 0 : index
      %c0_17 = arith.constant 0 : index
      %31 = vector.load %arg7[%c0_16, %c0_17] : memref<8x1xf32, #tpu.memory_space<vmem>>, vector<8x1xf32>
      tpu.vector_store %arg7[%c0_16, %c0_17], %30 {strides = array<i32>} : memref<8x1xf32, #tpu.memory_space<vmem>>, vector<8x1xf32>,
      %cst_18 = arith.constant 0.000000e+00 : f32
      %32 = vector.broadcast %cst_18 : f32 to vector<8x1xf32>
      %c0_19 = arith.constant 0 : index
      %c0_20 = arith.constant 0 : index
      %33 = vector.load %arg8[%c0_19, %c0_20] : memref<8x1xf32, #tpu.memory_space<vmem>>, vector<8x1xf32>
      tpu.vector_store %arg8[%c0_19, %c0_20], %32 {strides = array<i32>} : memref<8x1xf32, #tpu.memory_space<vmem>>, vector<8x1xf32>,
      %cst_21 = arith.constant 0.000000e+00 : f32
      %34 = vector.broadcast %cst_21 : f32 to vector<8x1xf32>
      %c0_22 = arith.constant 0 : index
      %c0_23 = arith.constant 0 : index
      %35 = vector.load %arg9[%c0_22, %c0_23] : memref<8x1xf32, #tpu.memory_space<vmem>>, vector<8x1xf32>
      tpu.vector_store %arg9[%c0_22, %c0_23], %34 {strides = array<i32>} : memref<8x1xf32, #tpu.memory_space<vmem>>, vector<8x1xf32>,
    } else {
    }
    %c1_i32_12 = arith.constant 1 : i32
    %23 = arith.cmpi eq, %arg1, %c1_i32_12 : i32
    %24 = arith.extui %23 : i1 to i32
    %c0_i32_13 = arith.constant 0 : i32
    %25 = arith.cmpi ne, %24, %c0_i32_13 : i32
    scf.if %25 {
      %c0_16 = arith.constant 0 : index
      %c0_17 = arith.constant 0 : index
      %30 = vector.load %arg10[%c0_16, %c0_17] : memref<8x1xf32, #tpu.memory_space<vmem>>, vector<8x1xf32>
      %31 = vector.broadcast %30 : vector<8x1xf32> to vector<8x128xf32>
      %32 = arith.subf %7, %31 : vector<8x128xf32>
      %33 = math.absf %32 : vector<8x128xf32>
      %c0_18 = arith.constant 0 : index
      %c0_19 = arith.constant 0 : index
      %34 = vector.load %arg11[%c0_18, %c0_19] : memref<8x1xf32, #tpu.memory_space<vmem>>, vector<8x1xf32>
      %35 = vector.broadcast %34 : vector<8x1xf32> to vector<8x128xf32>
      %36 = arith.cmpf olt, %33, %35 : vector<8x128xf32>
      %37 = arith.extui %36 : vector<8x128xi1> to vector<8x128xi32>
      %38 = arith.sitofp %37 : vector<8x128xi32> to vector<8x128xf32>
      %c0_20 = arith.constant 0 : index
      %c0_21 = arith.constant 0 : index
      %39 = vector.load %arg9[%c0_20, %c0_21] : memref<8x1xf32, #tpu.memory_space<vmem>>, vector<8x1xf32>
      %cst = arith.constant dense<0.000000e+00> : vector<8xf32>
      %40 = vector.multi_reduction <add>, %38, %cst [1] : vector<8x128xf32> to vector<8xf32>
      %41 = vector.shape_cast %40 : vector<8xf32> to vector<8x1xf32>
      %42 = arith.addf %39, %41 : vector<8x1xf32>
      %c0_22 = arith.constant 0 : index
      %c0_23 = arith.constant 0 : index
      %43 = vector.load %arg9[%c0_22, %c0_23] : memref<8x1xf32, #tpu.memory_space<vmem>>, vector<8x1xf32>
      tpu.vector_store %arg9[%c0_22, %c0_23], %42 {strides = array<i32>} : memref<8x1xf32, #tpu.memory_space<vmem>>, vector<8x1xf32>,
      %c0_24 = arith.constant 0 : index
      %c0_25 = arith.constant 0 : index
      %44 = vector.load %arg7[%c0_24, %c0_25] : memref<8x1xf32, #tpu.memory_space<vmem>>, vector<8x1xf32>
      %45 = arith.mulf %32, %38 : vector<8x128xf32>
      %cst_26 = arith.constant dense<0.000000e+00> : vector<8xf32>
      %46 = vector.multi_reduction <add>, %45, %cst_26 [1] : vector<8x128xf32> to vector<8xf32>
      %47 = vector.shape_cast %46 : vector<8xf32> to vector<8x1xf32>
      %48 = arith.addf %44, %47 : vector<8x1xf32>
      %c0_27 = arith.constant 0 : index
      %c0_28 = arith.constant 0 : index
      %49 = vector.load %arg7[%c0_27, %c0_28] : memref<8x1xf32, #tpu.memory_space<vmem>>, vector<8x1xf32>
      tpu.vector_store %arg7[%c0_27, %c0_28], %48 {strides = array<i32>} : memref<8x1xf32, #tpu.memory_space<vmem>>, vector<8x1xf32>,
      %c0_29 = arith.constant 0 : index
      %c0_30 = arith.constant 0 : index
      %50 = vector.load %arg8[%c0_29, %c0_30] : memref<8x1xf32, #tpu.memory_space<vmem>>, vector<8x1xf32>
      %51 = arith.mulf %32, %32 : vector<8x128xf32>
      %52 = arith.mulf %51, %38 : vector<8x128xf32>
      %cst_31 = arith.constant dense<0.000000e+00> : vector<8xf32>
      %53 = vector.multi_reduction <add>, %52, %cst_31 [1] : vector<8x128xf32> to vector<8xf32>
      %54 = vector.shape_cast %53 : vector<8xf32> to vector<8x1xf32>
      %55 = arith.addf %50, %54 : vector<8x1xf32>
      %c0_32 = arith.constant 0 : index
      %c0_33 = arith.constant 0 : index
      %56 = vector.load %arg8[%c0_32, %c0_33] : memref<8x1xf32, #tpu.memory_space<vmem>>, vector<8x1xf32>
      tpu.vector_store %arg8[%c0_32, %c0_33], %55 {strides = array<i32>} : memref<8x1xf32, #tpu.memory_space<vmem>>, vector<8x1xf32>,
    } else {
    }
    %c1_i32_14 = arith.constant 1 : i32
    %26 = arith.cmpi eq, %arg1, %c1_i32_14 : i32
    %27 = arith.andi %26, %5 : i1
    %28 = arith.extui %27 : i1 to i32
    %c0_i32_15 = arith.constant 0 : i32
    %29 = arith.cmpi ne, %28, %c0_i32_15 : i32
    scf.if %29 {
      %c0_16 = arith.constant 0 : index
      %c0_17 = arith.constant 0 : index
      %30 = vector.load %arg9[%c0_16, %c0_17] : memref<8x1xf32, #tpu.memory_space<vmem>>, vector<8x1xf32>
      %cst = arith.constant 1.000000e+00 : f32
      %31 = vector.broadcast %cst : f32 to vector<8x1xf32>
      %32 = arith.divf %31, %30 : vector<8x1xf32>
      %c0_18 = arith.constant 0 : index
      %c0_19 = arith.constant 0 : index
      %33 = vector.load %arg7[%c0_18, %c0_19] : memref<8x1xf32, #tpu.memory_space<vmem>>, vector<8x1xf32>
      %34 = arith.mulf %33, %32 : vector<8x1xf32>
      %c0_20 = arith.constant 0 : index
      %c0_21 = arith.constant 0 : index
      %35 = vector.load %arg10[%c0_20, %c0_21] : memref<8x1xf32, #tpu.memory_space<vmem>>, vector<8x1xf32>
      %36 = arith.addf %35, %34 : vector<8x1xf32>
      %c0_22 = arith.constant 0 : index
      %c0_23 = arith.constant 0 : index
      %37 = vector.load %arg5[%c0_22, %c0_23] : memref<8x1xf32, #tpu.memory_space<vmem>>, vector<8x1xf32>
      tpu.vector_store %arg5[%c0_22, %c0_23], %36 {strides = array<i32>} : memref<8x1xf32, #tpu.memory_space<vmem>>, vector<8x1xf32>,
      %c0_24 = arith.constant 0 : index
      %c0_25 = arith.constant 0 : index
      %38 = vector.load %arg8[%c0_24, %c0_25] : memref<8x1xf32, #tpu.memory_space<vmem>>, vector<8x1xf32>
      %39 = arith.mulf %38, %32 : vector<8x1xf32>
      %40 = arith.mulf %34, %34 : vector<8x1xf32>
      %41 = arith.subf %39, %40 : vector<8x1xf32>
      %c0_26 = arith.constant 0 : index
      %c0_27 = arith.constant 0 : index
      %42 = vector.load %arg6[%c0_26, %c0_27] : memref<8x1xf32, #tpu.memory_space<vmem>>, vector<8x1xf32>
      tpu.vector_store %arg6[%c0_26, %c0_27], %41 {strides = array<i32>} : memref<8x1xf32, #tpu.memory_space<vmem>>, vector<8x1xf32>,
    } else {
    }
    return
  }
  func.func @transform_0(%arg0: i32, %arg1: i32, %arg2: i32, %arg3: i32) -> (i32, i32, i32) {
    %c0_i32 = arith.constant 0 : i32
    return %arg2, %arg0, %arg3 : i32, i32, i32
  }
  func.func @transform_1(%arg0: i32, %arg1: i32, %arg2: i32, %arg3: i32) -> (i32, i32) {
    %c0_i32 = arith.constant 0 : i32
    %c0_i32_0 = arith.constant 0 : i32
    return %arg0, %c0_i32 : i32, i32
  }
  func.func @transform_2(%arg0: i32, %arg1: i32, %arg2: i32, %arg3: i32) -> (i32, i32) {
    %c0_i32 = arith.constant 0 : i32
    %c0_i32_0 = arith.constant 0 : i32
    return %arg0, %c0_i32 : i32, i32
  }
}

module attributes {stable_mosaic.version = 11 : i64} {
  func.func @_norm_kernel(%arg0: i32, %arg1: i32, %arg2: memref<1x16x128xf32, #tpu.memory_space<vmem>>, %arg3: memref<1x16x1xf32, #tpu.memory_space<vmem>>, %arg4: memref<1x16x1xf32, #tpu.memory_space<vmem>>, %arg5: memref<1x1x128xf32, #tpu.memory_space<vmem>>, %arg6: memref<1x1x128xf32, #tpu.memory_space<vmem>>, %arg7: memref<1x16x128xf32, #tpu.memory_space<vmem>>) attributes {dimension_semantics = [#tpu.dimension_semantics<parallel>, #tpu.dimension_semantics<parallel>], iteration_bounds = array<i64: 2, 1>, scalar_prefetch = 0 : i64, scratch_operands = 0 : i64, tpu.core_type = #tpu.core_type<tc>, window_params = [{transform_indices = @transform_0, window_bounds = array<i64: 1, 16, 128>}, {pipeline_mode = #tpu.pipeline_mode<synchronous>, transform_indices = @transform_1, window_bounds = array<i64: 1, 16, 1>}, {pipeline_mode = #tpu.pipeline_mode<synchronous>, transform_indices = @transform_2, window_bounds = array<i64: 1, 16, 1>}, {transform_indices = @transform_3, window_bounds = array<i64: 1, 1, 128>}, {transform_indices = @transform_4, window_bounds = array<i64: 1, 1, 128>}, {transform_indices = @transform_5, window_bounds = array<i64: 1, 16, 128>}]} {
    %c0 = arith.constant 0 : index
    %c0_0 = arith.constant 0 : index
    %c0_1 = arith.constant 0 : index
    %0 = vector.load %arg2[%c0, %c0_0, %c0_1] : memref<1x16x128xf32, #tpu.memory_space<vmem>>, vector<1x16x128xf32>
    %c0_2 = arith.constant 0 : index
    %c0_3 = arith.constant 0 : index
    %c0_4 = arith.constant 0 : index
    %1 = vector.load %arg3[%c0_2, %c0_3, %c0_4] : memref<1x16x1xf32, #tpu.memory_space<vmem>>, vector<1x16x1xf32>
    %c0_5 = arith.constant 0 : index
    %c0_6 = arith.constant 0 : index
    %c0_7 = arith.constant 0 : index
    %2 = vector.load %arg5[%c0_5, %c0_6, %c0_7] : memref<1x1x128xf32, #tpu.memory_space<vmem>>, vector<1x1x128xf32>
    %3 = vector.broadcast %2 : vector<1x1x128xf32> to vector<1x16x128xf32>
    %4 = arith.subf %0, %3 : vector<1x16x128xf32>
    %5 = vector.broadcast %1 : vector<1x16x1xf32> to vector<1x16x128xf32>
    %6 = arith.mulf %5, %4 : vector<1x16x128xf32>
    %c0_8 = arith.constant 0 : index
    %c0_9 = arith.constant 0 : index
    %c0_10 = arith.constant 0 : index
    %7 = vector.load %arg6[%c0_8, %c0_9, %c0_10] : memref<1x1x128xf32, #tpu.memory_space<vmem>>, vector<1x1x128xf32>
    %8 = vector.broadcast %7 : vector<1x1x128xf32> to vector<1x16x128xf32>
    %9 = arith.mulf %6, %8 : vector<1x16x128xf32>
    %c0_11 = arith.constant 0 : index
    %c0_12 = arith.constant 0 : index
    %c0_13 = arith.constant 0 : index
    %10 = vector.load %arg4[%c0_11, %c0_12, %c0_13] : memref<1x16x1xf32, #tpu.memory_space<vmem>>, vector<1x16x1xf32>
    %11 = vector.broadcast %10 : vector<1x16x1xf32> to vector<1x16x128xf32>
    %12 = arith.addf %9, %11 : vector<1x16x128xf32>
    %c0_14 = arith.constant 0 : index
    %c0_15 = arith.constant 0 : index
    %c0_16 = arith.constant 0 : index
    %13 = vector.load %arg7[%c0_14, %c0_15, %c0_16] : memref<1x16x128xf32, #tpu.memory_space<vmem>>, vector<1x16x128xf32>
    tpu.vector_store %arg7[%c0_14, %c0_15, %c0_16], %12 {strides = array<i32>} : memref<1x16x128xf32, #tpu.memory_space<vmem>>, vector<1x16x128xf32>,
    return
  }
  func.func @transform_0(%arg0: i32, %arg1: i32) -> (i32, i32, i32) {
    %c0_i32 = arith.constant 0 : i32
    %c0_i32_0 = arith.constant 0 : i32
    return %arg0, %c0_i32, %arg1 : i32, i32, i32
  }
  func.func @transform_1(%arg0: i32, %arg1: i32) -> (i32, i32, i32) {
    %c0_i32 = arith.constant 0 : i32
    %c0_i32_0 = arith.constant 0 : i32
    %c0_i32_1 = arith.constant 0 : i32
    %c0_i32_2 = arith.constant 0 : i32
    return %c0_i32, %c0_i32_0, %c0_i32_1 : i32, i32, i32
  }
  func.func @transform_2(%arg0: i32, %arg1: i32) -> (i32, i32, i32) {
    %c0_i32 = arith.constant 0 : i32
    %c0_i32_0 = arith.constant 0 : i32
    %c0_i32_1 = arith.constant 0 : i32
    %c0_i32_2 = arith.constant 0 : i32
    return %c0_i32, %c0_i32_0, %c0_i32_1 : i32, i32, i32
  }
  func.func @transform_3(%arg0: i32, %arg1: i32) -> (i32, i32, i32) {
    %c0_i32 = arith.constant 0 : i32
    %c0_i32_0 = arith.constant 0 : i32
    %c0_i32_1 = arith.constant 0 : i32
    return %c0_i32, %c0_i32_0, %arg1 : i32, i32, i32
  }
  func.func @transform_4(%arg0: i32, %arg1: i32) -> (i32, i32, i32) {
    %c0_i32 = arith.constant 0 : i32
    %c0_i32_0 = arith.constant 0 : i32
    %c0_i32_1 = arith.constant 0 : i32
    return %c0_i32, %c0_i32_0, %arg1 : i32, i32, i32
  }
  func.func @transform_5(%arg0: i32, %arg1: i32) -> (i32, i32, i32) {
    %c0_i32 = arith.constant 0 : i32
    %c0_i32_0 = arith.constant 0 : i32
    return %arg0, %c0_i32, %arg1 : i32, i32, i32
  }
}

</mosaic_0001>

<bundles_post_ra>
// kernel: tile.19
= control target key start
LH: loop header
LB: loop body
LE: loop exit
PB: predicated region body
PF: predicated region fallthrough
CT: control target
= control target key end

     0   :  { %s67_s10 = smov 112   ;;  %s68_s11 = smov 80   ;;  %vm3_vm0 = vcmask 130048   ;;  %vm9_vm1 = vcmask 1048448   ;;  %vm15_vm2 = vcmask 917248   ;;  %vm21_vm3 = vcmask 786048   ;;  %s111_s0 = inlined_call_operand.vmem [shape: f32[8,16], index: 0, kind: input, shape index: {}]   ;;  %s112_s1 = inlined_call_operand.vmem [shape: f32[1,1,128], index: 1, kind: output, shape index: {}]  }
   0x1   :  { %v53_v0 = vld [vmem:[%s111_s0 + $0x7] sm:$0x1]   ;;  %v55_v1 = vld [vmem:[%s111_s0 + $0x5] sm:$0x1]   ;;  %v54_v2 = vld [vmem:[%s111_s0 + $0x6] sm:$0x1]  }
   0x2   :  { %7 = vrot.lane.b32.xlu0 %v53_v0, %s67_s10  ;;  %19 = vrot.lane.b32.xlu1 %v55_v1, %s68_s11  ;;  %v56_v3 = vld [vmem:[%s111_s0 + $0x4] sm:$0x1]   ;;  %v2_v4 = vld [vmem:[%s111_s0] sm:$0x1]   ;;  %s69_s18 = smov 96   ;;  %s70_s19 = smov 64  }
   0x3   :  { %4 = vst.msk [vmem:[#allocation0] sm:$0x1] %vm3_vm0, %v2_v4   ;;  %v57_v5 = vld [vmem:[%s111_s0 + $0x3] sm:$0x1]   ;;  %v58_v6 = vld [vmem:[%s111_s0 + $0x2] sm:$0x1]  }
   0x4   :  { %s71_s24 = smov 48   ;;  %s72_s25 = smov 32   ;;  %v59_v7 = vld [vmem:[%s111_s0 + $0x1] sm:$0x1]   ;;  %vm27_vm4 = vcmask 654848   ;;  %vm33_vm5 = vcmask 523648  }
   0x5   :  { %s73_s0 = smov 16   ;;  %vm39_vm6 = vcmask 392448   ;;  %vm45_vm7 = vcmask 261248  }
   0x6   :  { %13 = vrot.lane.b32.xlu0 %v54_v2, %s69_s18  ;;  %25 = vrot.lane.b32.xlu1 %v56_v3, %s70_s19 }
   0xa   :  { %31 = vrot.lane.b32.xlu0 %v57_v5, %s71_s24  ;;  %37 = vrot.lane.b32.xlu1 %v58_v6, %s72_s25 }
   0xe   :  { %43 = vrot.lane.b32.xlu0 %v59_v7, %s73_s0 }
  0x74   :  { %v8_v8 = vpop.permute.xlu0 %7   ;;  %v20_v9 = vpop.permute.xlu1 %19  }
  0x75   :  { %10 = vst.msk [vmem:[#allocation0] sm:$0x1] %vm9_vm1, %v8_v8  }
  0x78   :  { %v14_v10 = vpop.permute.xlu0 %13   ;;  %v26_v11 = vpop.permute.xlu1 %25  }
  0x79   :  { %16 = vst.msk [vmem:[#allocation0] sm:$0x1] %vm15_vm2, %v14_v10  }
  0x7a   :  { %22 = vst.msk [vmem:[#allocation0] sm:$0x1] %vm21_vm3, %v20_v9  }
  0x7b   :  { %28 = vst.msk [vmem:[#allocation0] sm:$0x1] %vm27_vm4, %v26_v11  }
  0x7c   :  { %v32_v12 = vpop.permute.xlu0 %31   ;;  %v38_v13 = vpop.permute.xlu1 %37  }
  0x7d   :  { %34 = vst.msk [vmem:[#allocation0] sm:$0x1] %vm33_vm5, %v32_v12  }
  0x7e   :  { %40 = vst.msk [vmem:[#allocation0] sm:$0x1] %vm39_vm6, %v38_v13  }
  0x80   :  { %v44_v14 = vpop.permute.xlu0 %43  }
  0x81   :  { %46 = vst.msk [vmem:[#allocation0] sm:$0x1] %vm45_vm7, %v44_v14  }
  0x88   :  { %v50_v15 = vld [vmem:[#allocation0] sm:$0x1] }
  0x89   :  { %52 = vst [vmem:[%s112_s1] sm:$0x1] %v50_v15 }

// kernel: tile.18
= control target key start
LH: loop header
LB: loop body
LE: loop exit
PB: predicated region body
PF: predicated region fallthrough
CT: control target
= control target key end

     0   :  { %s22_s0 = inlined_call_operand.vmem [shape: f32[16], index: 0, kind: input, shape index: {}]   ;;  %s23_s1 = inlined_call_operand.vmem [shape: f32[8,16], index: 1, kind: output, shape index: {}]  }
   0x1   :  { %v4_v0 = vld [vmem:[%s22_s0] ss:$0 sm:$0xff] }
   0x2   :  { %5 = vst [vmem:[%s23_s1] sm:$0xff] %v4_v0 }

// kernel: bn2d_filtered_moments.3
= control target key start
LH: loop header
LB: loop body
LE: loop exit
PB: predicated region body
PF: predicated region fallthrough
CT: control target
= control target key end

     0   :  { %s541_s18 = smov 0   ;;  %s543_s19 = smov 0   ;;  %s592_s0 = inlined_call_operand.vmem [shape: f32[2,16,128], index: 0, kind: input, shape index: {}]   ;;  %s593_s1 = inlined_call_operand.vmem [shape: f32[1,16,1], index: 1, kind: input, shape index: {}]   ;;  %s594_s2 = inlined_call_operand.vmem [shape: f32[1,16,1], index: 2, kind: input, shape index: {}]   ;;  %s595_s3 = inlined_call_operand.vmem [shape: f32[1,1,128], index: 3, kind: input, shape index: {}]   ;;  %s596_s4 = inlined_call_operand.vmem [shape: f32[1,1,128], index: 4, kind: input, shape index: {}]   ;;  %s597_s5 = inlined_call_operand.vmem [shape: f32[2,16,128], index: 5, kind: output, shape index: {}]  }
   0x1   :  { %s545_s20 = smov 0  }
   0x2 LB: > { %s27_s21 = sadd.s32 1, %s504_s19  ;;  %p448_p0 = scmp.ge.s32.totalorder %s508_s20, 1  ;;  %s508_s20 = sphi %s545_s20, %s15_s20   ;;  %s504_s19 = sphi %s543_s19, %s599_s19   ;;  %s500_s18 = sphi %s541_s18, %s598_s18  }
   0x3   : > { %p29_p1 = scmp.ge.s32.totalorder %s27_s21, 2  ;;  %p222_p2 = scmp.lt.s32.totalorder %s508_s20, 3 }
   0x5   : > { %s601_s21 = smov (%p29_p1, %s27_s21), 0  ;;  %p223_p3 = pnand %p448_p0, %p222_p2 }
   0x6   : > { %v318_v0 = vld [vmem:[%s594_s2] sm:$0xff] (!%p223_p3)  ;;  %v510_v2 = vmov (!%p223_p3), 0   ;;  %v319_v3 = vld [vmem:[%s594_s2 + $0x8] sm:$0xff] (!%p223_p3)  ;;  %p262_p4 = scmp.lt.s32.totalorder (!%p223_p3), %s500_s18, 1 }
   0x7   : > { %226 = sbr.rel (%p223_p3) target bundleno = 147 (0x93), region = 40  ;;  %v286_v1 = vld [vmem:[%s593_s1] sm:$0xff] (!%p223_p3)  ;;  %485 = vset.pattern.permute.xlu1 (!%p223_p3), %v510_v2  ;;  %484 = vset.pattern.permute.xlu0 (!%p223_p3), %v510_v2  ;;  %v287_v4 = vld [vmem:[%s593_s1 + $0x8] sm:$0xff] (!%p223_p3) }
   0x8   : > { %322 = vperm.xlu1 (!%p223_p3), %485, %v318_v0   ;;  %299 = vperm.xlu0 (!%p223_p3), %484, %v286_v1   ;;  %v453_v5 = vld [vmem:[%s595_s3] ss:$0 sm:$0xff] (!%p223_p3) }
   0x9   : > { %v454_v9 = vld [vmem:[%s596_s4] ss:$0 sm:$0xff] (!%p223_p3) }
   0xc   : > { %327 = vperm.xlu1 (!%p223_p3), %485, %v319_v3   ;;  %304 = vperm.xlu0 (!%p223_p3), %484, %v287_v4  }
   0xe   : > { %s603_s18 = smov (!%p262_p4, %s500_s18), 1 }
   0xf   : > { %s457_s30 = sshll.u32 %s603_s18, 4 }
  0x10   : > { %s269_s8 = scalar_lea.vmem %s592_s0, %s457_s30  ;;  %s283_s15 = scalar_lea.vmem %s597_s5, %s457_s30 }
  0x11   : > { %v284_v6 = vld [vmem:[%s269_s8] sm:$0xff]  ;;  %v285_v8 = vld [vmem:[%s269_s8 + $0x8] sm:$0xff] }
  0x12   : > { %v295_v7 = vsub.f32 %v284_v6, %v453_v5  ;;  %v296_v12 = vsub.f32 %v285_v8, %v453_v5 }
  0x87   : > { %v300_v10 = vpop.permute.xlu0 %299  ;;  %v323_v13 = vpop.permute.xlu1 %322 }
  0x88   : > { %v307_v11 = vmul.f32 %v300_v10, %v295_v7 }
  0x8a   : > { %v316_v14 = vmul.f32 %v454_v9, %v307_v11 }
  0x8b   : > { %v305_v15 = vpop.permute.xlu0 %304  ;;  %v328_v19 = vpop.permute.xlu1 %327 }
  0x8c   : > { %v330_v16 = vadd.f32 %v323_v13, %v316_v14  ;;  %v308_v17 = vmul.f32 %v305_v15, %v296_v12 }
  0x8e   : > { %332 = vst [vmem:[%s283_s15] sm:$0xff] %v330_v16  ;;  %v317_v18 = vmul.f32 %v454_v9, %v308_v17 }
  0x90   : > { %v331_v20 = vadd.f32 %v328_v19, %v317_v18 }
  0x92   : > { %333 = vst [vmem:[%s283_s15 + $0x8] sm:$0xff] %v331_v20 }
  0x93 PF: > { %s15_s20 = sadd.s32 1, %s508_s20   ;;  %s598_s18 = smov %s504_s19 }
  0x94   : > { %p12_p5 = scmp.ge.s32.totalorder %s15_s20, 4   ;;  %s599_s19 = smov %s601_s21 }
  0x96   :  { %14 = sbr.rel (!%p12_p5) target bundleno = 2 (0x2), region = 76 }

// kernel: bn2d_filtered_moments.2
= control target key start
LH: loop header
LB: loop body
LE: loop exit
PB: predicated region body
PF: predicated region fallthrough
CT: control target
= control target key end

     0   :  { %s591_s9 = smov 0   ;;  %s593_s10 = smov 0   ;;  %s705_s0 = inlined_call_operand.vmem [shape: f32[2,16,128], index: 0, kind: input, shape index: {}]   ;;  %s706_s1 = inlined_call_operand.vmem [shape: f32[16,1], index: 1, kind: output, shape index: {0}]   ;;  %s707_s2 = inlined_call_operand.vmem [shape: f32[16,1], index: 2, kind: output, shape index: {1}]  }
   0x1   :  { %s595_s11 = smov 0   ;;  %s597_s12 = smov 0  }
   0x2   :  { %s599_s13 = smov 0   ;;  %s601_s14 = smov 0  }
   0x3   :  { %s603_s15 = smov 0  }
   0x4 LB: > { %s31_s16 = sadd.s32 1, %s558_s12  ;;  %s35_s17 = sadd.s32 1, %s562_s13  ;;  %s570_s15 = sphi %s603_s15, %s13_s15   ;;  %s566_s14 = sphi %s601_s14, %s713_s14   ;;  %s562_s13 = sphi %s599_s13, %s712_s13   ;;  %s558_s12 = sphi %s597_s12, %s711_s12   ;;  %s554_s11 = sphi %s595_s11, %s710_s11   ;;  %s550_s10 = sphi %s593_s10, %s709_s10   ;;  %s546_s9 = sphi %s591_s9, %s708_s9  }
   0x5   : > { %p33_p0 = scmp.ge.s32.totalorder %s31_s16, 2  ;;  %p437_p1 = scmp.ge.s32.totalorder %s570_s15, 1 }
   0x6   : > { %p151_p2 = scmp.lt.s32.totalorder %s570_s15, 9  ;;  %s39_s18 = sadd.s32 1, %s566_s14 }
   0x7   : > { %s715_s16 = smov (%p33_p0, %s31_s16), 0  ;;  %s717_s17 = smov (!%p33_p0, %s35_s17), %s562_s13 }
   0x8   : > { %p152_p3 = pnand %p437_p1, %p151_p2  ;;  %p37_p4 = scmp.ge.s32.totalorder %s717_s17, 2 }
   0x9   : > { %p182_p6 = scmp.lt.s32.totalorder (!%p152_p3), %s546_s9, 1  ;;  %p184_p7 = scmp.lt.s32.totalorder (!%p152_p3), %s554_s11, 1 }
   0xa   : > { %s719_s17 = smov (%p37_p4, %s717_s17), 0  ;;  %s721_s18 = smov (!%p37_p4, %s39_s18), %s566_s14 }
   0xb   : > { %p41_p5 = scmp.ge.s32.totalorder %s721_s18, 2  ;;  %155 = sbr.rel (%p152_p3) target bundleno = 525 (0x20d), region = 24 }
   0xc   : > { %p201_p8 = scmp.eq.s32.totalorder (!%p152_p3), %s546_s9, 0  ;;  %p205_p9 = scmp.eq.s32.totalorder (!%p152_p3), %s546_s9, 1 }
   0xd   : > { %s723_s18 = smov (%p41_p5, %s721_s18), 0  ;;  %p209_p10 = scmp.eq.s32.totalorder (!%p152_p3), %s550_s10, 0 }
   0xf   : > { %p210_p11 = pnand (!%p152_p3), %p209_p10, %p201_p8 }
  0x12   : > { %s183_s19 = scalar_select %p182_p6, %s546_s9, 1 }
  0x13   : > { %s725_s11 = smov (!%p184_p7, %s554_s11), 1  ;;  %213 = sbr.rel (%p210_p11) target bundleno = 26 (0x1a), region = 28 }
  0x14   : > { %s438_s20 = sshll.u32 %s183_s19, 1  ;;  %s440_s22 = sshll.u32 %s725_s11, 3  ;;  %vm214_vm0 = vcmask (!%p210_p11), 7168   ;;  %v572_v1 = vmov (!%p210_p11), 0.0  }
  0x15   : > { %s190_s21 = sadd.s32 %s438_s20, %s725_s11  ;;  %s645_s26 = scalar_lea.vmem %s706_s1, %s440_s22  ;;  %215 = vst.msk [vmem:[#allocation2] sm:$0xff] (!%p210_p11), %vm214_vm0, %v572_v1  ;;  %216 = vst.msk [vmem:[#allocation3] sm:$0xff] (!%p210_p11), %vm214_vm0, %v572_v1 }
  0x16   : > { %s439_s23 = sshll.u32 %s190_s21, 3  ;;  %s653_s4 = scalar_lea.vmem %s707_s2, %s440_s22 }
  0x17   : > { %s192_s29 = scalar_lea.vmem %s705_s0, %s439_s23 }
  0x18   : > { %v655_v0 = vld [vmem:[%s192_s29] sm:$0xff] }
  0x1a PF: > { %p444_p12 = scmp.ne.s32.totalorder %s550_s10, 0 }
  0x1b   : > { %221 = vadd.xlane.f32.xlu0 (!%p444_p12), %v655_v0  ;;  %v227_v2 = vmul.f32 (!%p444_p12), %v655_v0, %v655_v0  ;;  %vm224_vm1 = vcmask (!%p444_p12), 7168  }
  0x1c   : > { %219 = sbr.rel (%p444_p12) target bundleno = 176 (0xb0), region = 32  ;;  %v220_v3 = vld [vmem:[#allocation2] sm:$0xff] (!%p444_p12)  ;;  %v226_v6 = vld [vmem:[#allocation3] sm:$0xff] (!%p444_p12) }
  0x1f   : > { %228 = vadd.xlane.f32.xlu0 (!%p444_p12), %v227_v2 }
  0xa8   : > { %v222_v4 = vpop.xlane.xlu0 %221 }
  0xa9   : > { %v223_v5 = vadd.f32 %v222_v4, %v220_v3 }
  0xab   : > { %225 = vst.msk [vmem:[#allocation2] sm:$0xff] %vm224_vm1, %v223_v5 }
  0xac   : > { %v229_v7 = vpop.xlane.xlu0 %228 }
  0xad   : > { %v230_v8 = vadd.f32 %v229_v7, %v226_v6 }
  0xaf   : > { %231 = vst.msk [vmem:[#allocation3] sm:$0xff] %vm224_vm1, %v230_v8 }
  0xb0 PF: > { %p232_p13 = pnand %p209_p10, %p205_p9 }
  0xb1   : > { %vm242_vm2 = vcmask (!%p232_p13), 7168  }
  0xb2   : > { %235 = sbr.rel (%p232_p13) target bundleno = 207 (0xcf), region = 36  ;;  %v236_v9 = vld [vmem:[#allocation2] sm:$0xff] (!%p232_p13) }
  0xb3   : > { %v237_v10 = vmul.f32 (!%p232_p13), 0.00390625, %v236_v9 }
  0xb5   : > { %v239_v12 = vmul.f32 (!%p232_p13), %v237_v10, %v236_v9  ;;  %243 = vst.msk [vmem:[#allocation5] sm:$0xff] (!%p232_p13), %vm242_vm2, %v237_v10 }
  0xb6   : > { %v238_v11 = vld [vmem:[#allocation3] sm:$0xff] (!%p232_p13) }
  0xb7   : > { %v240_v13 = vsub.f32 (!%p232_p13), %v238_v11, %v239_v12 }
  0xb9   : > { %v241_v14 = vmul.f32 0.003921569, %v240_v13 }
  0xbb   : > { %v244_v15 = vadd.f32 1e-10, %v241_v14 }
  0xbd   : > { %511 = vrsqrt.f32 %v244_v15  ;;  %vm247_vm3 = vcmp.eq.f32.partialorder %v244_v15, inf  ;;  %v250_v17 = vand.u32 2147483648, %v244_v15  ;;  %vm249_vm4 = vcmp.eq.f32.partialorder %v244_v15, 0.0 }
  0xc7   : > { %v512_v16 = vpop.eup %511 }
  0xc8   : > { %v246_v18 = vmul.f32 %v512_v16, %v244_v15 }
  0xca   : > { %v248_v19 = vsel %vm247_vm3, %v244_v15, %v246_v18 }
  0xcb   : > { %v251_v20 = vsel %vm249_vm4, %v250_v17, %v248_v19 }
  0xcc   : > { %v252_v21 = vmul.f32 4.0, %v251_v20 }
  0xce   : > { %253 = vst.msk [vmem:[#allocation6] sm:$0xff] %vm242_vm2, %v252_v21 }
  0xcf PF: > { %p254_p0 = scmp.eq.s32.totalorder %s550_s10, 1 }
  0xd1   : > { %p255_p1 = pnand %p254_p0, %p201_p8 }
  0xd2   : > { %vm259_vm5 = vcmask (!%p255_p1), 7168   ;;  %v573_v22 = vmov (!%p255_p1), 0.0  }
  0xd3   : > { %258 = sbr.rel (%p255_p1) target bundleno = 218 (0xda), region = 40  ;;  %260 = vst.msk [vmem:[#allocation2] sm:$0xff] (!%p255_p1), %vm259_vm5, %v573_v22  ;;  %261 = vst.msk [vmem:[#allocation3] sm:$0xff] (!%p255_p1), %vm259_vm5, %v573_v22 }
  0xd4   : > { %262 = vst.msk [vmem:[#allocation4] sm:$0xff] (!%p255_p1), %vm259_vm5, %v573_v22 }
  0xda PF: > { %p445_p2 = scmp.ne.s32.totalorder %s550_s10, 1 }
  0xdb   : > { %v266_v23 = vld [vmem:[#allocation5] sm:$0xff] (!%p445_p2)  ;;  %v574_v24 = vmov (!%p445_p2), 0   ;;  %v274_v25 = vld [vmem:[#allocation6] sm:$0xff] (!%p445_p2)  ;;  %v575_v31 = vmov (!%p445_p2), 0.0   ;;  %v283_v35 = vld [vmem:[#allocation4] sm:$0xff] (!%p445_p2)  ;;  %vm287_vm7 = vcmask (!%p445_p2), 7168  }
  0xdc   : > { %265 = sbr.rel (%p445_p2) target bundleno = 504 (0x1f8), region = 44  ;;  %513 = vset.pattern.permute.xlu0 (!%p445_p2), %v574_v24  ;;  %v295_v37 = vld [vmem:[#allocation3] sm:$0xff] (!%p445_p2)  ;;  %v289_v40 = vld [vmem:[#allocation2] sm:$0xff] (!%p445_p2) }
  0xdd   : > { %269 = vperm.xlu0 (!%p445_p2), %513, %v266_v23  }
  0xe1   : > { %277 = vperm.xlu0 (!%p445_p2), %513, %v274_v25  }
 0x15c   : > { %v270_v26 = vpop.permute.xlu0 %269 }
 0x15d   : > { %v272_v27 = vsub.f32 %v655_v0, %v270_v26 }
 0x15f   : > { %v273_v28 = vand.u32 2147483647, %v272_v27  ;;  %v296_v30 = vmul.f32 %v272_v27, %v272_v27 }
 0x160   : > { %v278_v29 = vpop.permute.xlu0 %277 }
 0x161   : > { %vm280_vm6 = vcmp.lt.f32.partialorder %v273_v28, %v278_v29 }
 0x162   : > { %v446_v32 = vsel %vm280_vm6, 1.0, %v575_v31 }
 0x163   : > { %284 = vadd.xlane.f32.xlu1 %v446_v32  ;;  %v297_v33 = vmul.f32 %v446_v32, %v296_v30  ;;  %v290_v34 = vmul.f32 %v446_v32, %v272_v27 }
 0x165   : > { %298 = vadd.xlane.f32.xlu0 %v297_v33 }
 0x167   : > { %291 = vadd.xlane.f32.xlu1 %v290_v34 }
 0x1f0   : > { %v285_v36 = vpop.xlane.xlu1 %284 }
 0x1f1   : > { %v286_v38 = vadd.f32 %v285_v36, %v283_v35 }
 0x1f2   : > { %v299_v39 = vpop.xlane.xlu0 %298 }
 0x1f3   : > { %288 = vst.msk [vmem:[#allocation4] sm:$0xff] %vm287_vm7, %v286_v38  ;;  %v300_v41 = vadd.f32 %v299_v39, %v295_v37 }
 0x1f4   : > { %v292_v42 = vpop.xlane.xlu1 %291 }
 0x1f5   : > { %301 = vst.msk [vmem:[#allocation3] sm:$0xff] %vm287_vm7, %v300_v41  ;;  %v293_v43 = vadd.f32 %v292_v42, %v289_v40 }
 0x1f7   : > { %294 = vst.msk [vmem:[#allocation2] sm:$0xff] %vm287_vm7, %v293_v43 }
 0x1f8 PF: > { %p302_p3 = pnand %p254_p0, %p205_p9 }
 0x1f9   : > { %v311_v48 = vld [vmem:[#allocation5] sm:$0xff] (!%p302_p3)  ;;  %vm313_vm8 = vcmask (!%p302_p3), 7168  }
 0x1fa   : > { %305 = sbr.rel (%p302_p3) target bundleno = 525 (0x20d), region = 48  ;;  %v306_v44 = vld [vmem:[#allocation4] sm:$0xff] (!%p302_p3) }
 0x1fb   : > { %514 = vrcp.f32 (!%p302_p3), %v306_v44 }
 0x1fc   : > { %v315_v46 = vld [vmem:[#allocation3] sm:$0xff] (!%p302_p3) }
 0x1fe   : > { %v309_v45 = vld [vmem:[#allocation2] sm:$0xff] (!%p302_p3) }
 0x205   : > { %v515_v47 = vpop.eup %514 }
 0x206   : > { %v310_v49 = vmul.f32 %v515_v47, %v309_v45  ;;  %v316_v50 = vmul.f32 %v515_v47, %v315_v46 }
 0x208   : > { %v312_v51 = vadd.f32 %v311_v48, %v310_v49  ;;  %v317_v52 = vmul.f32 %v310_v49, %v310_v49 }
 0x20a   : > { %314 = vst.msk [vmem:[%s645_s26] sm:$0xff] %vm313_vm8, %v312_v51  ;;  %v318_v53 = vsub.f32 %v316_v50, %v317_v52 }
 0x20c   : > { %319 = vst.msk [vmem:[%s653_s4] sm:$0xff] %vm313_vm8, %v318_v53 }
 0x20d PF: > { %s13_s15 = sadd.s32 1, %s570_s15   ;;  %s708_s9 = smov %s558_s12 }
 0x20e   : > { %p10_p4 = scmp.ge.s32.totalorder %s13_s15, 10   ;;  %s709_s10 = smov %s562_s13 }
 0x20f   : > { %s710_s11 = smov %s566_s14  ;;  %s711_s12 = smov %s715_s16 }
 0x210   : > { %s712_s13 = smov %s719_s17  ;;  %s713_s14 = smov %s723_s18 }
 0x211   :  { %12 = sbr.rel (!%p10_p4) target bundleno = 4 (0x4), region = 90 }

</bundles_post_ra>
